<compile_context>
chip_gen: v5e
topology: v5e:2x2
jax: 0.10.0
libtpu: 0.0.40
codegen_flags: <defaults>
</compile_context>

<pallas_src>
import jax
import jax.numpy as jnp
from jax.experimental import pallas as pl
from jax.experimental.pallas import tpu as pltpu

SUBLANES = 8  # f32 sublane count


def _scale_kernel(feat_ref, w_ref, b_ref, out_ref):
    # feat_ref: (B_pad, nz_feat)  VMEM
    # w_ref   : (1, nz_feat)      VMEM  (nn.Linear weight row, PyTorch layout, no pad)
    # b_ref   : (1, 1)            SMEM  (scalar bias)
    # out_ref : (B_pad, 1)        VMEM
    #
    # d_out == 1: VPU elementwise multiply + XLU lane reduce. Exact f32
    # accumulation (matches PyTorch Linear), no MXU involvement.
    prods = feat_ref[...].astype(jnp.float32) * w_ref[...].astype(jnp.float32)
    y = jnp.sum(prods, axis=-1, keepdims=True)          # (B_pad, 1) f32
    out_ref[...] = (y + b_ref[0, 0]).astype(out_ref.dtype)


def prepare_params(weight, bias):
    """One-time parameter prep (amortized across calls).

    weight: (1, nz_feat) PyTorch nn.Linear layout; bias: (1,).
    No transpose or zero-padding needed for the VPU reduce path; bias is
    reshaped to (1, 1) so it can live in SMEM as a scalar.
    """
    assert weight.shape[0] == 1, "ScalePredictor head has a single output"
    return weight, bias.reshape(1, 1)


@jax.jit
def scale_predictor(feat, w_row, b_scalar):
    """feat: (B, nz_feat); w_row: (1, nz_feat); b_scalar: (1, 1)."""
    B, nz_feat = feat.shape

    # Keep (B, nz_feat) an integral number of sublanes; free at trace time,
    # no-op when B is already a multiple of 8.
    B_pad = ((B + SUBLANES - 1) // SUBLANES) * SUBLANES
    feat_p = feat if B_pad == B else jnp.pad(feat, ((0, B_pad - B), (0, 0)))

    bytes_accessed = 4 * (feat_p.size + w_row.size + b_scalar.size + B_pad)

    out = pl.pallas_call(
        _scale_kernel,
        out_shape=jax.ShapeDtypeStruct((B_pad, 1), feat.dtype),
        # No grid: single tile, whole operands resident on-chip, no pipeline
        # prologue/epilogue overhead.
        in_specs=[
            pl.BlockSpec(memory_space=pltpu.MemorySpace.VMEM),   # feat
            pl.BlockSpec(memory_space=pltpu.MemorySpace.VMEM),   # weight row
            pl.BlockSpec(memory_space=pltpu.MemorySpace.SMEM),   # scalar bias
        ],
        out_specs=pl.BlockSpec(memory_space=pltpu.MemorySpace.VMEM),
        cost_estimate=pl.CostEstimate(
            flops=2 * B_pad * nz_feat,
            transcendentals=0,
            bytes_accessed=bytes_accessed,
        ),
    )(feat_p, w_row, b_scalar)

    return out if B_pad == B else out[:B]


def _reference(feat, weight, bias):
    return feat @ weight.T + bias


if __name__ == "__main__":
    # Small shapes consistent with the module: nz_feat=32, Linear(nz_feat, 1)
    B = 8
    nz_feat = 32
    d_out = 1

    key = jax.random.PRNGKey(0)
    k_feat, k_w, k_b = jax.random.split(key, 3)

    feat = jax.random.normal(k_feat, (B, nz_feat), dtype=jnp.float32)
    # Deterministic synthetic parameters in PyTorch nn.Linear layout:
    # weight (d_out, nz_feat), bias (d_out,)
    weight = jax.random.normal(k_w, (d_out, nz_feat), dtype=jnp.float32) * 0.02
    bias = jax.random.normal(k_b, (d_out,), dtype=jnp.float32) * 0.01

    # One-time (amortized) layout prep outside the hot path.
    w_row, b_sc = prepare_params(weight, bias)

    out = scale_predictor(feat, w_row, b_sc)
    out = jax.block_until_ready(out)

    ref = _reference(feat, weight, bias)
    assert out.shape == (B, d_out)
    assert jnp.allclose(out, ref, atol=1e-5, rtol=1e-5), "mismatch vs reference"

    print("KERNEL_OK")
</pallas_src>

<mosaic_0001>
module attributes {stable_mosaic.version = 11 : i64} {
  func.func @_scale_kernel(%arg0: memref<8x32xf32, #tpu.memory_space<vmem>>, %arg1: memref<1x32xf32, #tpu.memory_space<vmem>>, %arg2: memref<1x1xf32, #tpu.memory_space<smem>>, %arg3: memref<8x1xf32, #tpu.memory_space<vmem>>) attributes {dimension_semantics = [], scalar_prefetch = 0 : i64, scratch_operands = 0 : i64, tpu.core_type = #tpu.core_type<tc>} {
    %c0 = arith.constant 0 : index
    %c0_0 = arith.constant 0 : index
    %0 = vector.load %arg0[%c0, %c0_0] : memref<8x32xf32, #tpu.memory_space<vmem>>, vector<8x32xf32>
    %c0_1 = arith.constant 0 : index
    %c0_2 = arith.constant 0 : index
    %1 = vector.load %arg1[%c0_1, %c0_2] : memref<1x32xf32, #tpu.memory_space<vmem>>, vector<1x32xf32>
    %2 = vector.broadcast %1 : vector<1x32xf32> to vector<8x32xf32>
    %3 = arith.mulf %0, %2 : vector<8x32xf32>
    %cst = arith.constant dense<0.000000e+00> : vector<8xf32>
    %4 = vector.multi_reduction <add>, %3, %cst [1] : vector<8x32xf32> to vector<8xf32>
    %5 = vector.shape_cast %4 : vector<8xf32> to vector<8x1xf32>
    %c0_3 = arith.constant 0 : index
    %c0_4 = arith.constant 0 : index
    %6 = memref.load %arg2[%c0_3, %c0_4] : memref<1x1xf32, #tpu.memory_space<smem>>
    %7 = vector.broadcast %6 : f32 to vector<8x1xf32>
    %8 = arith.addf %5, %7 : vector<8x1xf32>
    %c0_5 = arith.constant 0 : index
    %c0_6 = arith.constant 0 : index
    %9 = vector.load %arg3[%c0_5, %c0_6] : memref<8x1xf32, #tpu.memory_space<vmem>>, vector<8x1xf32>
    tpu.vector_store %arg3[%c0_5, %c0_6], %8 {strides = array<i32>} : memref<8x1xf32, #tpu.memory_space<vmem>>, vector<8x1xf32>,
    return
  }
}

</mosaic_0001>

<bundles_post_ra>
// kernel: scale_predictor.1
= control target key start
LH: loop header
LB: loop body
LE: loop exit
PB: predicated region body
PF: predicated region fallthrough
CT: control target
= control target key end

     0   :  { %9 = vsyncpa [#allocation4], 0  ;;  %s77_s15 = smov [#allocation3]   ;;  %s110_s0 = inlined_call_operand.hbm [shape: f32[8,32], index: 0, kind: input, shape index: {}]   ;;  %s111_s1 = inlined_call_operand.vmem [shape: f32[1,32], index: 1, kind: input, shape index: {}]   ;;  %s112_s2 = inlined_call_operand.<no memory space> [shape: f32[1,1], index: 2, kind: input, shape index: {}]   ;;  %s113_s3 = inlined_call_operand.vmem [shape: f32[8,1], index: 3, kind: output, shape index: {}]  }
   0x1   :  { %s15_s14 = sshll.u32 %s110_s0, 4  ;;  %s17_s16 = sshll.u32 %s77_s15, 4  ;;  %s16_s14 = int_to_ptr.hbm [resolvable:$true] %s15_s14  ;;  %s18_s16 = int_to_ptr.vmem [resolvable:$true] %s17_s16 }
   0x2   :  { %20 = dma.hbm_to_vmem [thread:$0]  %s16_s14, 128, %s18_s16, [#allocation4]  }
   0x3   :  { %75 = dma.done.wait [#allocation4], 128  }
   0x4   :  { %76 = vsyncadd [#allocation4], 4294967168  ;;  %v29_v0 = vld [vmem:[#allocation3] sm:$0xff]  ;;  %vm35_vm0 = vcmask 261120   ;;  %v40_v4 = vstv %s112_s2  ;;  %vm42_vm1 = vcmask 7168  }
   0x5   :  { %v50_v1 = vld [vmem:[%s111_s1] ss:$0 sm:$0xff] }
   0x6   :  { %v34_v2 = vmul.f32 %v50_v1, %v29_v0 }
   0x8   :  { %v36_v3 = vsel %vm35_vm0, %v34_v2, 0.0 }
   0x9   :  { %37 = vadd.xlane.f32.xlu0 %v36_v3 }
  0x7c   :  { %v38_v5 = vpop.xlane.xlu0 %37 }
  0x7d   :  { %v41_v6 = vadd.f32 %v40_v4, %v38_v5 }
  0x7f   :  { %43 = vst.msk [vmem:[%s113_s3] sm:$0xff] %vm42_vm1, %v41_v6 }
  0x80   :  { %48 = vsyncpa [#allocation4], 1 }

</bundles_post_ra>
